<compile_context>
chip_gen: v5e
topology: v5e:2x2
jax: 0.10.0
libtpu: 0.0.40
codegen_flags: <defaults>
</compile_context>

<pallas_src>
import functools

import jax
import jax.numpy as jnp
from jax.experimental import pallas as pl
from jax.experimental.pallas import tpu as pltpu


# --------------------------------------------------------------------------- #
# Kernel
# --------------------------------------------------------------------------- #
def _label_smoothing_kernel(pred_ref, target_ref, out_ref, *,
                            confidence: float, smooth_val: float,
                            lse_coef: float, num_rows: int, row_tile: int,
                            ragged: bool):
    """One grid step: (row_tile, C) logits -> one lane-dense partial-sum block."""
    i = pl.program_id(0)

    x = pred_ref[...].astype(jnp.float32)                       # (TN, C)
    tgt = target_ref[...]                                       # (TN, 1) int32

    # log-softmax pieces along the class (lane) axis.
    m = jnp.max(x, axis=-1, keepdims=True)                      # (TN, 1)
    shifted = x - m                                             # (TN, C)
    lse_rel = jnp.log(jnp.sum(jnp.exp(shifted), axis=-1, keepdims=True))

    # Fused weighted reduce: one cross-lane sum instead of two.
    #   sum_c true_dist_c * logp_c = sum_c w_c * shifted_c - lse_coef * lse_rel
    col = jax.lax.broadcasted_iota(jnp.int32, x.shape, 1)       # (TN, C)
    w = jnp.where(col == tgt, jnp.float32(confidence), jnp.float32(smooth_val))
    weighted_sum = jnp.sum(w * shifted, axis=-1, keepdims=True)  # (TN, 1)

    row_loss = jnp.float32(lse_coef) * lse_rel - weighted_sum    # (TN, 1)

    def _write(masked: bool):
        rl = row_loss
        if masked:
            # Rows >= num_rows came from an out-of-bounds (ragged) block read;
            # where-select (not multiply) so garbage NaN/Inf cannot poison it.
            row_idx = i * row_tile + jax.lax.broadcasted_iota(
                jnp.int32, rl.shape, 0)
            rl = jnp.where(row_idx < num_rows, rl, jnp.float32(0.0))
        out_ref[...] = jnp.full(out_ref.shape, jnp.sum(rl), dtype=out_ref.dtype)

    if not ragged:
        _write(False)
    else:
        last = pl.num_programs(0) - 1

        @pl.when(i == last)
        def _():
            _write(True)

        @pl.when(i != last)
        def _():
            _write(False)


# --------------------------------------------------------------------------- #
# Tiling / VMEM sizing helpers (generation-aware)
# --------------------------------------------------------------------------- #
def _round_up(x: int, m: int) -> int:
    return ((x + m - 1) // m) * m


def _vmem_capacity_bytes(default: int = 64 << 20) -> int:
    """Physical VMEM per TensorCore; conservative (v7x) default if unknown."""
    try:
        return int(pltpu.get_tpu_info().vmem_capacity_bytes)
    except Exception:
        return default


def _scoped_vmem_cap(vmem_capacity: int) -> int:
    """Generation-aware scoped-VMEM ceiling for this kernel."""
    if vmem_capacity >= (96 << 20):      # v5e / v6e: 128 MiB physical
        return 96 << 20
    return 46 << 20                      # v7x: 64 MiB physical per TC


def _pick_row_tile(n_rows: int, n_classes: int, itemsize: int,
                   vmem_budget: int, *, max_rows: int = 8192,
                   prefer_two_tiles: bool = True) -> int:
    """Largest multiple-of-8 row tile whose VMEM working set fits the budget."""
    c_pad = _round_up(max(n_classes, 1), 128)        # VMEM lane padding
    # 2x double-buffered input tile + ~4x live f32 intermediates, per row.
    per_row = 2 * c_pad * itemsize + 4 * c_pad * 4
    rt = max(8, (vmem_budget - (2 << 20)) // max(per_row, 1))
    rt = max(8, min(int(rt), max_rows) // 8 * 8)

    # Never bigger than the (8-padded) row count.
    rt = min(rt, max(8, _round_up(n_rows, 8)))

    # Keep >= 2 grid steps whenever possible so a dual-TC chip (v7x) can shard
    # the "parallel" axis; costs one extra ~0.35 us step on single-TC chips.
    if prefer_two_tiles and n_rows > 8:
        half = _round_up(-(-n_rows // 2), 8)
        rt = min(rt, max(8, half))
    return max(8, rt)


# --------------------------------------------------------------------------- #
# Public wrapper
# --------------------------------------------------------------------------- #
def label_smoothing_loss(pred, target, *, classes: int,
                         smoothing: float = 0.05,
                         row_tile: int | None = None):
    """Pallas equivalent of LabelSmoothingLoss(classes, smoothing).forward.

    `pred` may be f32 or bf16 (bf16 is the fast path: half the HBM reads;
    the f32 upcast happens in-kernel).
    """
    n, c = pred.shape
    assert c == classes

    confidence = 1.0 - smoothing
    smooth_val = smoothing / (classes - 1)
    lse_coef = smooth_val * (classes - 1) + confidence   # == 1.0 exactly

    itemsize = jnp.dtype(pred.dtype).itemsize
    vmem_cap = _vmem_capacity_bytes()
    vmem_limit_cap = _scoped_vmem_cap(vmem_cap)

    if row_tile is None:
        row_tile = _pick_row_tile(n, c, itemsize, vmem_limit_cap)
    assert row_tile % 8 == 0

    num_tiles = -(-n // row_tile)
    ragged = (n % row_tile) != 0

    # Only the tiny int32 target vector is padded; the (N, C) logits are NOT
    # copied -- the ragged last block reads OOB rows and is masked in-kernel.
    n_tgt = num_tiles * row_tile
    if n_tgt != n:
        target = jnp.pad(target, (0, n_tgt - n))
    target2d = target.astype(jnp.int32).reshape(n_tgt, 1)

    kernel = functools.partial(_label_smoothing_kernel,
                               confidence=confidence,
                               smooth_val=smooth_val,
                               lse_coef=lse_coef,
                               num_rows=n,
                               row_tile=row_tile,
                               ragged=ragged)

    # Scoped-VMEM request: 2x double-buffered input tile + ~4x f32 temps
    # (lane-padded), clamped to the generation-aware ceiling.
    c_pad = _round_up(c, 128)
    tile_in = row_tile * c_pad * itemsize
    tile_f32 = row_tile * c_pad * 4
    vmem_limit = int(max(16 << 20,
                         min(2 * tile_in + 4 * tile_f32 + (2 << 20),
                             vmem_limit_cap)))

    partials = pl.pallas_call(
        kernel,
        out_shape=jax.ShapeDtypeStruct((num_tiles, 1, 128), jnp.float32),
        grid_spec=pltpu.PrefetchScalarGridSpec(
            num_scalar_prefetch=0,
            grid=(num_tiles,),
            in_specs=[
                pl.BlockSpec((row_tile, c), lambda i: (i, 0)),
                pl.BlockSpec((row_tile, 1), lambda i: (i, 0)),
            ],
            out_specs=pl.BlockSpec((1, 1, 128), lambda i: (i, 0, 0)),
        ),
        # TODO(synk): confirm in xprof that the "parallel" axis shards across
        # v7x's 2 TensorCores; if not, switch to CORE_PARALLEL / core_map.
        compiler_params=pltpu.CompilerParams(
            dimension_semantics=("parallel",),
            vmem_limit_bytes=vmem_limit),
    )(pred, target2d)

    # Final tiny reduction + torch.mean over the batch dimension, in plain JAX.
    return jnp.sum(partials[:, 0, 0]) / jnp.float32(n)


# --------------------------------------------------------------------------- #
# Reference + demo
# --------------------------------------------------------------------------- #
def _reference(pred, target, classes, smoothing=0.05):
    """Plain-JAX reference matching the PyTorch module."""
    logp = jax.nn.log_softmax(pred.astype(jnp.float32), axis=-1)
    confidence = 1.0 - smoothing
    true_dist = jnp.full_like(logp, smoothing / (classes - 1))
    true_dist = true_dist.at[jnp.arange(pred.shape[0]), target].set(confidence)
    return jnp.mean(jnp.sum(-true_dist * logp, axis=-1))


if __name__ == "__main__":
    key = jax.random.PRNGKey(0)
    k_pred, k_tgt, k_pred2, k_tgt2 = jax.random.split(key, 4)

    # Check 1: batch of 8 examples, 32 classes, f32, auto row_tile.
    N, C = 8, 32
    pred = jax.random.normal(k_pred, (N, C), dtype=jnp.float32)
    target = jax.random.randint(k_tgt, (N,), 0, C, dtype=jnp.int32)

    loss = label_smoothing_loss(pred, target, classes=C, smoothing=0.05)
    jax.block_until_ready(loss)
    ref = _reference(pred, target, C, smoothing=0.05)
    assert jnp.allclose(loss, ref, atol=1e-5, rtol=1e-5), (loss, ref)

    # Check 2: N not a multiple of the row tile + multiple grid tiles
    # (exercises the no-pad ragged OOB read, pl.when mask gating and the
    # per-tile partial-sum outputs).
    N2, C2 = 20, 32
    pred2 = jax.random.normal(k_pred2, (N2, C2), dtype=jnp.float32)
    target2 = jax.random.randint(k_tgt2, (N2,), 0, C2, dtype=jnp.int32)

    loss2 = label_smoothing_loss(pred2, target2, classes=C2,
                                 smoothing=0.05, row_tile=8)
    jax.block_until_ready(loss2)
    ref2 = _reference(pred2, target2, C2, smoothing=0.05)
    assert jnp.allclose(loss2, ref2, atol=1e-5, rtol=1e-5), (loss2, ref2)

    # Check 3: bf16 fast path (auto row_tile -> 2 tiles, ragged last tile).
    pred3 = pred2.astype(jnp.bfloat16)
    loss3 = label_smoothing_loss(pred3, target2, classes=C2, smoothing=0.05)
    jax.block_until_ready(loss3)
    ref3 = _reference(pred3, target2, C2, smoothing=0.05)
    assert jnp.allclose(loss3, ref3, atol=1e-5, rtol=1e-5), (loss3, ref3)

    print("KERNEL_OK")
</pallas_src>

<mosaic_0001>
module attributes {stable_mosaic.version = 11 : i64} {
  func.func @_label_smoothing_kernel(%arg0: i32, %arg1: memref<8x32xf32, #tpu.memory_space<vmem>>, %arg2: memref<8x1xi32, #tpu.memory_space<vmem>>, %arg3: memref<1x1x128xf32, #tpu.memory_space<vmem>>) attributes {dimension_semantics = [#tpu.dimension_semantics<parallel>], iteration_bounds = array<i64: 1>, scalar_prefetch = 0 : i64, scratch_operands = 0 : i64, tpu.core_type = #tpu.core_type<tc>, window_params = [{transform_indices = @transform_0, window_bounds = array<i64: 8, 32>}, {transform_indices = @transform_1, window_bounds = array<i64: 8, 1>}, {transform_indices = @transform_2, window_bounds = array<i64: 1, 1, 128>}]} {
    %c0 = arith.constant 0 : index
    %c0_0 = arith.constant 0 : index
    %0 = vector.load %arg1[%c0, %c0_0] : memref<8x32xf32, #tpu.memory_space<vmem>>, vector<8x32xf32>
    %c0_1 = arith.constant 0 : index
    %c0_2 = arith.constant 0 : index
    %1 = vector.load %arg2[%c0_1, %c0_2] : memref<8x1xi32, #tpu.memory_space<vmem>>, vector<8x1xi32>
    %cst = arith.constant dense<0xFF800000> : vector<8xf32>
    %2 = vector.multi_reduction <maximumf>, %0, %cst [1] : vector<8x32xf32> to vector<8xf32>
    %3 = vector.shape_cast %2 : vector<8xf32> to vector<8x1xf32>
    %4 = vector.broadcast %3 : vector<8x1xf32> to vector<8x32xf32>
    %5 = arith.subf %0, %4 : vector<8x32xf32>
    %6 = math.exp %5 : vector<8x32xf32>
    %cst_3 = arith.constant dense<0.000000e+00> : vector<8xf32>
    %7 = vector.multi_reduction <add>, %6, %cst_3 [1] : vector<8x32xf32> to vector<8xf32>
    %8 = vector.shape_cast %7 : vector<8xf32> to vector<8x1xf32>
    %9 = math.log %8 : vector<8x1xf32>
    %10 = tpu.iota {dimensions = array<i32: 1>} : vector<8x32xi32>
    %11 = vector.broadcast %1 : vector<8x1xi32> to vector<8x32xi32>
    %12 = arith.cmpi eq, %10, %11 : vector<8x32xi32>
    %cst_4 = arith.constant 0.949999988 : f32
    %cst_5 = arith.constant 0.0016129032 : f32
    %13 = vector.broadcast %cst_4 : f32 to vector<8x32xf32>
    %14 = vector.broadcast %cst_5 : f32 to vector<8x32xf32>
    %15 = arith.select %12, %13, %14 : vector<8x32xi1>, vector<8x32xf32>
    %16 = arith.mulf %15, %5 : vector<8x32xf32>
    %cst_6 = arith.constant dense<0.000000e+00> : vector<8xf32>
    %17 = vector.multi_reduction <add>, %16, %cst_6 [1] : vector<8x32xf32> to vector<8xf32>
    %18 = vector.shape_cast %17 : vector<8xf32> to vector<8x1xf32>
    %cst_7 = arith.constant 1.000000e+00 : f32
    %19 = vector.broadcast %cst_7 : f32 to vector<8x1xf32>
    %20 = arith.mulf %19, %9 : vector<8x1xf32>
    %21 = arith.subf %20, %18 : vector<8x1xf32>
    %22 = vector.shape_cast %21 : vector<8x1xf32> to vector<1x8x1xf32>
    %cst_8 = arith.constant dense<0.000000e+00> : vector<1xf32>
    %23 = vector.multi_reduction <add>, %22, %cst_8 [1, 2] : vector<1x8x1xf32> to vector<1xf32>
    %24 = vector.shape_cast %23 : vector<1xf32> to vector<1x1x1xf32>
    %25 = vector.extract %24[0, 0, 0] : f32 from vector<1x1x1xf32>
    %26 = vector.broadcast %25 : f32 to vector<1x1x128xf32>
    %c0_9 = arith.constant 0 : index
    %c0_10 = arith.constant 0 : index
    %c0_11 = arith.constant 0 : index
    %27 = vector.load %arg3[%c0_9, %c0_10, %c0_11] : memref<1x1x128xf32, #tpu.memory_space<vmem>>, vector<1x1x128xf32>
    tpu.vector_store %arg3[%c0_9, %c0_10, %c0_11], %26 {strides = array<i32>} : memref<1x1x128xf32, #tpu.memory_space<vmem>>, vector<1x1x128xf32>,
    return
  }
  func.func @transform_0(%arg0: i32) -> (i32, i32) {
    %c0_i32 = arith.constant 0 : i32
    %c0_i32_0 = arith.constant 0 : i32
    return %arg0, %c0_i32 : i32, i32
  }
  func.func @transform_1(%arg0: i32) -> (i32, i32) {
    %c0_i32 = arith.constant 0 : i32
    %c0_i32_0 = arith.constant 0 : i32
    return %arg0, %c0_i32 : i32, i32
  }
  func.func @transform_2(%arg0: i32) -> (i32, i32, i32) {
    %c0_i32 = arith.constant 0 : i32
    %c0_i32_0 = arith.constant 0 : i32
    %c0_i32_1 = arith.constant 0 : i32
    return %arg0, %c0_i32, %c0_i32_0 : i32, i32, i32
  }
}

</mosaic_0001>

<bundles_post_ra>
// kernel: tpu_custom_call.1
= control target key start
LH: loop header
LB: loop body
LE: loop exit
PB: predicated region body
PF: predicated region fallthrough
CT: control target
= control target key end

     0   :  { %vm14_vm0 = vcmask 261120   ;;  %s133_s0 = inlined_call_operand.vmem [shape: f32[8,32], index: 0, kind: input, shape index: {}]   ;;  %s134_s1 = inlined_call_operand.vmem [shape: s32[8,1], index: 1, kind: input, shape index: {}]   ;;  %s135_s2 = inlined_call_operand.hbm [shape: f32[1,1,128], index: 2, kind: output, shape index: {}]  }
   0x1   :  { %v12_v0 = vld [vmem:[%s133_s0] sm:$0xff] }
   0x2   :  { %7 = vsyncpa [#allocation3], 0  ;;  %v15_v1 = vsel %vm14_vm0, %v12_v0, -inf  ;;  %v103_v2 = vmov 0   ;;  %v13_v3 = vld [vmem:[%s134_s1] sm:$0xff]  ;;  %v26_v9 = vlaneseq  ;;  %vm38_vm2 = vcmask 7168  }
   0x3   :  { %72 = vset.pattern.permute.xlu0 %v103_v2  ;;  %v104_v12 = vmov 0.0016129032   ;;  %s105_s0 = smov [#allocation2]   ;;  %s58_s15 = sshll.u32 %s135_s2, 4  ;;  %s59_s15 = int_to_ptr.hbm [resolvable:$true] %s58_s15 }
   0x4   :  { %16 = vmax.xlane.f32.xlu0 %v15_v1  ;;  %v27_v10 = vand.u32 127, %v26_v9  ;;  %s56_s1 = sshll.u32 %s105_s0, 4  ;;  %s57_s1 = int_to_ptr.vmem [resolvable:$true] %s56_s1 }
  0x18   :  { %29 = vperm.xlu0 %72, %v13_v3  }
  0x77   :  { %v17_v4 = vpop.xlane.xlu0 %16 }
  0x78   :  { %v18_v5 = vsub.f32 %v12_v0, %v17_v4 }
  0x7a   :  { %v19_v6 = vmul.f32 1.442695, %v18_v5 }
  0x7c   :  { %73 = vpow2.f32 %v19_v6 }
  0x82   :  { %v74_v7 = vpop.eup %73 }
  0x83   :  { %v21_v8 = vsel %vm14_vm0, %v74_v7, 0.0 }
  0x84   :  { %22 = vadd.xlane.f32.xlu1 %v21_v8 }
  0x8a   :  { %v30_v11 = vpop.permute.xlu0 %29 }
  0x8b   :  { %vm31_vm1 = vcmp.eq.s32.totalorder %v27_v10, %v30_v11 }
  0x8c   :  { %v32_v13 = vsel %vm31_vm1, 0.95, %v104_v12 }
  0x8d   :  { %v33_v14 = vmul.f32 %v32_v13, %v18_v5 }
  0x8f   :  { %v34_v15 = vsel %vm14_vm0, %v33_v14, 0.0 }
  0x90   :  { %35 = vadd.xlane.f32.xlu1 %v34_v15 }
  0xf7   :  { %v23_v16 = vpop.xlane.xlu1 %22 }
  0xf8   :  { %75 = vlog2.f32 %v23_v16 }
  0xfe   :  { %v76_v17 = vpop.eup %75 }
  0xff   :  { %v25_v18 = vmul.f32 0.6931472, %v76_v17 }
 0x103   :  { %v36_v19 = vpop.xlane.xlu1 %35 }
 0x104   :  { %v37_v20 = vsub.f32 %v25_v18, %v36_v19 }
 0x106   :  { %v39_v21 = vsel %vm38_vm2, %v37_v20, 0.0 }
 0x107   :  { %40 = vadd.xlane.f32.xlu2 %v39_v21 }
 0x17a   :  { %v41_v22 = vpop.xlane.xlu2 %40 }
 0x17b   :  { %v42_v23 = vrot.slane %v41_v22, 4 }
 0x17d   :  { %v43_v24 = vadd.f32 %v42_v23, %v41_v22 }
 0x17f   :  { %v44_v25 = vrot.slane %v43_v24, 2 }
 0x181   :  { %v45_v26 = vadd.f32 %v44_v25, %v43_v24 }
 0x183   :  { %v46_v27 = vrot.slane %v45_v26, 1 }
 0x185   :  { %v47_v28 = vadd.f32 %v46_v27, %v45_v26 }
 0x187   :  { %67 = vpush %v47_v28 }
 0x1b8   :  { %s68_s16 = spop %67 }
 0x1b9   :  { %v49_v29 = vstv %s68_s16 }
 0x1ba   :  { %50 = vst [vmem:[#allocation2] sm:$0x1] %v49_v29 }
 0x1bb   :  { %61 = dma.vmem_to_hbm [thread:$0]  %s57_s1, 16, %s59_s15, [#allocation3]  }
 0x1bc   :  { %101 = dma.done.wait [#allocation3], 16  }
 0x1bd   :  { %102 = vsyncadd [#allocation3], 4294967280 }
 0x1be   :  { %66 = vsyncpa [#allocation3], 1 }

</bundles_post_ra>
